<compile_context>
chip_gen: v5e
topology: v5e:2x2
jax: 0.10.0
libtpu: 0.0.40
codegen_flags: <defaults>
</compile_context>

<pallas_src>
import functools
from typing import NamedTuple

import jax
import jax.numpy as jnp
from jax.experimental import pallas as pl
from jax.experimental.pallas import tpu as pltpu

_F32 = jnp.float32
_BF16 = jnp.bfloat16
_OUT_LANES = 128  # lane-dense packed output width
_VMEM = pl.BlockSpec(memory_space=pltpu.MemorySpace.VMEM)
_SMEM = pl.BlockSpec(memory_space=pltpu.MemorySpace.SMEM)


def _round_up(n, m):
    return ((n + m - 1) // m) * m


class _PolicyDims(NamedTuple):
    enc_hidden: int
    enc_out: int
    p_hidden: int
    v_hidden: int
    L: int
    K: int
    wp2_row: int   # bf16 slab row offsets
    we2_row: int
    opp_row: int   # f32 table row offsets
    wv2_row: int
    bias_row: int


class _HeadDims(NamedTuple):
    hid: int
    out: int
    L: int
    K: int
    aim_row: int
    w2_row: int
    b2_row: int


# ---------------------------------------------------------------------------
# Kernels
# ---------------------------------------------------------------------------
def _policy_kernel(dims, idx_ref, x_ref, we1_ref, wb_ref, ft_ref, out_ref):
    """Encoder + policy head + value head, fully fused.

    idx_ref (SMEM int32): per-example [label, opp_aim_0, ..., opp_aim_{L-1}].
    we1_ref: (in_dim, enc_hidden) bf16 encoder first-layer weight.
    wb_ref : bf16 slab. rows [0:enc_out]          = [wp1z | wv1z]
                        rows [wp2_row:+p_hidden]  = wp2  (lanes 0:L*K)
                        rows [we2_row:+enc_hidden]= we2  (lanes 0:enc_out)
    ft_ref : f32 const/gather table (width p_hidden+v_hidden):
             rows [0:n_labels]   = [lab@wp1l+bp1 | lab@wv1l+bv1]
             rows [opp_row:+L*K] = opponent-aim value contribs (value lanes)
             row  [wv2_row]      = wv2.T           (lanes 0:v_hidden)
             rows [bias_row:+4]  = be1, be2, bp2, bv2
    out_ref: (B, 128) f32: lanes [0:L*K] = aim logits, lane [L*K] = value.
    """
    EH, EO, PH, VH, L, K = (dims.enc_hidden, dims.enc_out, dims.p_hidden,
                            dims.v_hidden, dims.L, dims.K)
    LK = L * K
    B = x_ref.shape[0]

    # ---- in-kernel gathers: fused first-layer context (label + opp aim) ----
    # TODO(synk): vectorize the gather (one-hot matmul) if B grows beyond O(16).
    rows = []
    for b in range(B):
        r = ft_ref[pl.ds(idx_ref[b, 0], 1), :]
        for l in range(L):
            r = r + ft_ref[pl.ds(dims.opp_row + l * K + idx_ref[b, 1 + l], 1), :]
        rows.append(r)
    ctx = jnp.concatenate(rows, axis=0)                       # (B, PH+VH) f32

    # ---- vqvae.encoder: Flatten -> Linear -> ReLU -> Linear ----
    x = x_ref[...].astype(_BF16)                              # cast in-kernel
    be1 = ft_ref[dims.bias_row:dims.bias_row + 1, 0:EH]
    h = jnp.dot(x, we1_ref[...], preferred_element_type=_F32) + be1
    h = jnp.maximum(h, 0.0)
    we2 = wb_ref[dims.we2_row:dims.we2_row + EH, 0:EO]
    be2 = ft_ref[dims.bias_row + 1:dims.bias_row + 2, 0:EO]
    z_e = jnp.dot(h.astype(_BF16), we2, preferred_element_type=_F32) + be2
    z_b = z_e.astype(_BF16)

    # ---- fused policy/value first layer: one matmul, one ReLU ----
    w1f = wb_ref[0:EO, :]                                     # (EO, PH+VH) bf16
    hf = jnp.dot(z_b, w1f, preferred_element_type=_F32) + ctx
    hf = jnp.maximum(hf, 0.0)
    hp = hf[:, 0:PH]                                          # lane-tile aligned
    hv = hf[:, PH:PH + VH]

    # ---- policy second layer ----
    wp2 = wb_ref[dims.wp2_row:dims.wp2_row + PH, 0:LK]
    bp2 = ft_ref[dims.bias_row + 2:dims.bias_row + 3, 0:LK]
    logits = jnp.dot(hp.astype(_BF16), wp2, preferred_element_type=_F32) + bp2

    # ---- value second layer: Linear(256, 1) as VPU multiply + lane reduce ----
    wv2 = ft_ref[dims.wv2_row:dims.wv2_row + 1, 0:VH]
    bv2 = ft_ref[dims.bias_row + 3:dims.bias_row + 4, 0:1]
    value = jnp.sum(hv * wv2, axis=-1, keepdims=True) + bv2   # (B, 1)

    # ---- single full-width unmasked store ----
    pad = jnp.zeros((B, out_ref.shape[1] - LK), _F32)
    row = jnp.concatenate([logits, pad], axis=1)              # (B, 128)
    lane = jax.lax.broadcasted_iota(jnp.int32, (B, out_ref.shape[1]), 1)
    out_ref[...] = jnp.where(lane == LK, value, row)


def _head_kernel(dims, idx_ref, tbl_ref, out_ref):
    """Linear(cat([aim_emb_flat, label_feat])) -> ReLU -> Linear.

    The entire first layer (aim-embedding gather, label embedding, weights,
    bias) is pre-folded into rows of tbl_ref and realized as in-kernel row
    gathers + adds; the second layer is a tiny f32 matmul.
    """
    HID, OUT, L, K = dims.hid, dims.out, dims.L, dims.K
    B = idx_ref.shape[0]
    rows = []
    for b in range(B):
        r = tbl_ref[pl.ds(idx_ref[b, 0], 1), :]
        for l in range(L):
            r = r + tbl_ref[pl.ds(dims.aim_row + l * K + idx_ref[b, 1 + l], 1), :]
        rows.append(r)
    h = jnp.maximum(jnp.concatenate(rows, axis=0), 0.0)       # (B, 128) f32
    w2 = tbl_ref[dims.w2_row:dims.w2_row + HID, 0:OUT]
    b2 = tbl_ref[dims.b2_row:dims.b2_row + 1, 0:OUT]
    y = jnp.dot(h[:, 0:HID], w2, preferred_element_type=_F32) + b2
    pad = jnp.zeros((B, out_ref.shape[1] - OUT), _F32)
    out_ref[...] = jnp.concatenate([y, pad], axis=1)          # single store


# ---------------------------------------------------------------------------
# Jitted end-to-end apply functions (single executable per mode)
# ---------------------------------------------------------------------------
def _policy_apply(x, label, opp_aim, we1, wslab, ftab, *, dims):
    B = x.shape[0]
    x_flat = x.reshape(B, -1)                                 # stays f32
    idx = jnp.concatenate(
        [label.reshape(B, 1).astype(jnp.int32),
         opp_aim.reshape(B, dims.L).astype(jnp.int32)], axis=1)
    packed = pl.pallas_call(
        functools.partial(_policy_kernel, dims),
        out_shape=jax.ShapeDtypeStruct((B, _OUT_LANES), _F32),
        in_specs=[_SMEM, _VMEM, _VMEM, _VMEM, _VMEM],
        out_specs=_VMEM,
    )(idx, x_flat, we1, wslab, ftab)
    LK = dims.L * dims.K
    return packed[:, :LK].reshape(B, dims.L, dims.K), packed[:, LK]


def _head_apply(aim_idx, label, tbl, *, dims, view_seq):
    B = aim_idx.shape[0]
    idx = jnp.concatenate(
        [label.reshape(B, 1).astype(jnp.int32),
         aim_idx.reshape(B, dims.L).astype(jnp.int32)], axis=1)
    packed = pl.pallas_call(
        functools.partial(_head_kernel, dims),
        out_shape=jax.ShapeDtypeStruct((B, _OUT_LANES), _F32),
        in_specs=[_SMEM, _VMEM],
        out_specs=_VMEM,
    )(idx, tbl)
    out = packed[:, :dims.out]
    if view_seq:
        out = out.reshape(B, dims.L, dims.K)
    return out


# ---------------------------------------------------------------------------
# Parameter construction + wrapper
# ---------------------------------------------------------------------------
def _linear_init(key, fan_in, fan_out):
    kw, kb = jax.random.split(key)
    bound = 1.0 / float(fan_in) ** 0.5
    w = jax.random.uniform(kw, (fan_in, fan_out), _F32, -bound, bound)
    b = jax.random.uniform(kb, (1, fan_out), _F32, -bound, bound)
    return w, b


class AgentAPallas:
    def __init__(self, key, *, in_dim, enc_hidden=32, enc_out=16,
                 aim_seq_len=2, K=16, D=8, n_labels=10, label_dim=8):
        L = aim_seq_len
        self.aim_seq_len, self.K, self.D = L, K, D
        PH, VH, HH = 128, 256, 64
        LK = L * K
        assert LK + 1 <= _OUT_LANES, "packed output overflows 128 lanes (L*K+1)"

        keys = jax.random.split(key, 12)
        # synthetic vqvae.encoder (Flatten -> Linear -> ReLU -> Linear)
        we1, be1 = _linear_init(keys[0], in_dim, enc_hidden)
        we2, be2 = _linear_init(keys[1], enc_hidden, enc_out)
        label_embed = jax.random.normal(keys[2], (n_labels, label_dim), _F32)
        aim_embedding = jax.random.normal(keys[3], (K, D), _F32)
        wp1, bp1 = _linear_init(keys[4], enc_out + label_dim, PH)
        wp2, bp2 = _linear_init(keys[5], PH, LK)
        cdim = enc_out + label_dim + L * D
        wv1, bv1 = _linear_init(keys[6], cdim, VH)
        wv2, bv2 = _linear_init(keys[7], VH, 1)
        wo1, bo1 = _linear_init(keys[8], L * D + label_dim, HH)
        wo2, bo2 = _linear_init(keys[9], HH, LK)
        wi1, bi1 = _linear_init(keys[10], L * D + label_dim, HH)
        wi2, bi2 = _linear_init(keys[11], HH, 2)

        # exact realization of torch.cat(dim=1): split first-layer weights
        wp1z, wp1l = wp1[:enc_out], wp1[enc_out:]
        wv1z = wv1[:enc_out]
        wv1l = wv1[enc_out:enc_out + label_dim]
        wv1o = wv1[enc_out + label_dim:]                       # (L*D, 256)
        wo1a, wo1l = wo1[:L * D], wo1[L * D:]
        wi1a, wi1l = wi1[:L * D], wi1[L * D:]

        # ---- bf16 weight slab: [wp1z|wv1z] ++ wp2 ++ we2 ----
        wp2_row = _round_up(enc_out, 16)
        we2_row = wp2_row + _round_up(PH, 16)
        ws_rows = we2_row + _round_up(enc_hidden, 16)
        wslab = jnp.zeros((ws_rows, PH + VH), _F32)
        wslab = wslab.at[0:enc_out, :].set(jnp.concatenate([wp1z, wv1z], axis=1))
        wslab = wslab.at[wp2_row:wp2_row + PH, 0:LK].set(wp2)
        wslab = wslab.at[we2_row:we2_row + enc_hidden, 0:enc_out].set(we2)
        wslab = wslab.astype(_BF16)

        # ---- f32 const + gather table (Embedding->Linear folds, exact) ----
        opp_row = _round_up(n_labels, 8)
        wv2_row = _round_up(opp_row + LK, 8)
        bias_row = wv2_row + 1
        ft_rows = _round_up(bias_row + 4, 8)
        ftab = jnp.zeros((ft_rows, PH + VH), _F32)
        ftab = ftab.at[0:n_labels, 0:PH].set(label_embed @ wp1l + bp1)
        ftab = ftab.at[0:n_labels, PH:PH + VH].set(label_embed @ wv1l + bv1)
        for l in range(L):
            ftab = ftab.at[opp_row + l * K: opp_row + (l + 1) * K, PH:PH + VH].set(
                aim_embedding @ wv1o[l * D:(l + 1) * D])
        ftab = ftab.at[wv2_row, 0:VH].set(wv2[:, 0])
        ftab = ftab.at[bias_row, 0:enc_hidden].set(be1[0])
        ftab = ftab.at[bias_row + 1, 0:enc_out].set(be2[0])
        ftab = ftab.at[bias_row + 2, 0:LK].set(bp2[0])
        ftab = ftab.at[bias_row + 3, 0:1].set(bv2[0])

        self._we1 = we1.astype(_BF16)
        self._wslab = wslab
        self._ftab = ftab
        pdims = _PolicyDims(enc_hidden, enc_out, PH, VH, L, K,
                            wp2_row, we2_row, opp_row, wv2_row, bias_row)
        self._policy_fn = jax.jit(functools.partial(_policy_apply, dims=pdims))

        # ---- predictor heads: first layer fully pre-folded into a table ----
        def head_table(w1a, w1l, b1, w2, b2, out_dim):
            aim_row = _round_up(n_labels, 8)
            w2_row = _round_up(aim_row + LK, 8)
            b2_row = w2_row + HH
            rows = _round_up(b2_row + 1, 8)
            t = jnp.zeros((rows, _OUT_LANES), _F32)
            t = t.at[0:n_labels, 0:HH].set(label_embed @ w1l + b1)
            for l in range(L):
                t = t.at[aim_row + l * K: aim_row + (l + 1) * K, 0:HH].set(
                    aim_embedding @ w1a[l * D:(l + 1) * D])
            t = t.at[w2_row:w2_row + HH, 0:out_dim].set(w2)
            t = t.at[b2_row, 0:out_dim].set(b2[0])
            return t, _HeadDims(HH, out_dim, L, K, aim_row, w2_row, b2_row)

        self._otab, odims = head_table(wo1a, wo1l, bo1, wo2, bo2, LK)
        self._itab, idims = head_table(wi1a, wi1l, bi1, wi2, bi2, 2)
        self._opp_fn = jax.jit(functools.partial(_head_apply, dims=odims, view_seq=True))
        self._int_fn = jax.jit(functools.partial(_head_apply, dims=idims, view_seq=False))

    def forward(self, x, label, opponent_aim_sequence=None, mode="policy",
                self_aim_for_prediction=None, own_aim_for_intent=None):
        if mode == "policy":
            # TODO(synk): if B grows, add a B-tiled grid (row tiles multiple of
            # 16, dimension_semantics=("parallel",)) sized for v7x's 64 MiB VMEM.
            return self._policy_fn(x, label, opponent_aim_sequence,
                                   self._we1, self._wslab, self._ftab)
        elif mode == "predict_opponent_aim":
            if self_aim_for_prediction is None:
                raise ValueError("self_aim_for_prediction must be provided.")
            return self._opp_fn(self_aim_for_prediction, label, self._otab)
        elif mode == "predict_own_intent":
            if own_aim_for_intent is None:
                raise ValueError("own_aim_for_intent must be provided.")
            return self._int_fn(own_aim_for_intent, label, self._itab)
        else:
            raise NotImplementedError(f"Mode '{mode}' not implemented.")


# ---------------------------------------------------------------------------
if __name__ == "__main__":
    key = jax.random.PRNGKey(0)
    k_param, k_x = jax.random.split(key)

    B, C, H, W = 2, 4, 16, 16
    aim_seq_len, K = 2, 16

    agent = AgentAPallas(k_param, in_dim=C * H * W,
                         aim_seq_len=aim_seq_len, K=K, D=8)

    x = jax.random.normal(k_x, (B, C, H, W), _F32)
    label = jnp.array([3, 7], dtype=jnp.int32)
    opp_aim = jnp.array([[1, 5], [10, 2]], dtype=jnp.int32)   # (B, aim_seq_len)
    own_aim = jnp.array([[0, 15], [4, 9]], dtype=jnp.int32)

    # policy mode (main hot path)
    aim_logits, value = agent.forward(x, label,
                                      opponent_aim_sequence=opp_aim,
                                      mode="policy")
    jax.block_until_ready((aim_logits, value))
    assert aim_logits.shape == (B, aim_seq_len, K)
    assert value.shape == (B,)

    # predictor modes
    opp_pred = agent.forward(x, label, mode="predict_opponent_aim",
                             self_aim_for_prediction=own_aim)
    intent = agent.forward(x, label, mode="predict_own_intent",
                           own_aim_for_intent=own_aim)
    jax.block_until_ready((opp_pred, intent))
    assert opp_pred.shape == (B, aim_seq_len, K)
    assert intent.shape == (B, 2)

    print("KERNEL_OK")
</pallas_src>

<mosaic_0001>
module attributes {stable_mosaic.version = 11 : i64} {
  func.func @_policy_kernel(%arg0: memref<2x3xi32, #tpu.memory_space<smem>>, %arg1: memref<2x1024xf32, #tpu.memory_space<vmem>>, %arg2: memref<1024x32xbf16, #tpu.memory_space<vmem>>, %arg3: memref<176x384xbf16, #tpu.memory_space<vmem>>, %arg4: memref<56x384xf32, #tpu.memory_space<vmem>>, %arg5: memref<2x128xf32, #tpu.memory_space<vmem>>) attributes {dimension_semantics = [], scalar_prefetch = 0 : i64, scratch_operands = 0 : i64, tpu.core_type = #tpu.core_type<tc>} {
    %c0 = arith.constant 0 : index
    %c0_0 = arith.constant 0 : index
    %0 = memref.load %arg0[%c0, %c0_0] : memref<2x3xi32, #tpu.memory_space<smem>>
    %1 = arith.index_cast %0 : i32 to index
    %c0_1 = arith.constant 0 : index
    %2 = vector.load %arg4[%1, %c0_1] : memref<56x384xf32, #tpu.memory_space<vmem>>, vector<1x384xf32>
    %c0_2 = arith.constant 0 : index
    %c1 = arith.constant 1 : index
    %3 = memref.load %arg0[%c0_2, %c1] : memref<2x3xi32, #tpu.memory_space<smem>>
    %c16_i32 = arith.constant 16 : i32
    %4 = arith.addi %c16_i32, %3 : i32
    %5 = arith.index_cast %4 : i32 to index
    %c0_3 = arith.constant 0 : index
    %6 = vector.load %arg4[%5, %c0_3] : memref<56x384xf32, #tpu.memory_space<vmem>>, vector<1x384xf32>
    %7 = arith.addf %2, %6 : vector<1x384xf32>
    %c0_4 = arith.constant 0 : index
    %c2 = arith.constant 2 : index
    %8 = memref.load %arg0[%c0_4, %c2] : memref<2x3xi32, #tpu.memory_space<smem>>
    %c32_i32 = arith.constant 32 : i32
    %9 = arith.addi %c32_i32, %8 : i32
    %10 = arith.index_cast %9 : i32 to index
    %c0_5 = arith.constant 0 : index
    %11 = vector.load %arg4[%10, %c0_5] : memref<56x384xf32, #tpu.memory_space<vmem>>, vector<1x384xf32>
    %12 = arith.addf %7, %11 : vector<1x384xf32>
    %c1_6 = arith.constant 1 : index
    %c0_7 = arith.constant 0 : index
    %13 = memref.load %arg0[%c1_6, %c0_7] : memref<2x3xi32, #tpu.memory_space<smem>>
    %14 = arith.index_cast %13 : i32 to index
    %c0_8 = arith.constant 0 : index
    %15 = vector.load %arg4[%14, %c0_8] : memref<56x384xf32, #tpu.memory_space<vmem>>, vector<1x384xf32>
    %c1_9 = arith.constant 1 : index
    %c1_10 = arith.constant 1 : index
    %16 = memref.load %arg0[%c1_9, %c1_10] : memref<2x3xi32, #tpu.memory_space<smem>>
    %c16_i32_11 = arith.constant 16 : i32
    %17 = arith.addi %c16_i32_11, %16 : i32
    %18 = arith.index_cast %17 : i32 to index
    %c0_12 = arith.constant 0 : index
    %19 = vector.load %arg4[%18, %c0_12] : memref<56x384xf32, #tpu.memory_space<vmem>>, vector<1x384xf32>
    %20 = arith.addf %15, %19 : vector<1x384xf32>
    %c1_13 = arith.constant 1 : index
    %c2_14 = arith.constant 2 : index
    %21 = memref.load %arg0[%c1_13, %c2_14] : memref<2x3xi32, #tpu.memory_space<smem>>
    %c32_i32_15 = arith.constant 32 : i32
    %22 = arith.addi %c32_i32_15, %21 : i32
    %23 = arith.index_cast %22 : i32 to index
    %c0_16 = arith.constant 0 : index
    %24 = vector.load %arg4[%23, %c0_16] : memref<56x384xf32, #tpu.memory_space<vmem>>, vector<1x384xf32>
    %25 = arith.addf %20, %24 : vector<1x384xf32>
    %26 = tpu.concatenate %12, %25 in 0 : vector<1x384xf32>, vector<1x384xf32> -> vector<2x384xf32>
    %c0_17 = arith.constant 0 : index
    %c0_18 = arith.constant 0 : index
    %27 = vector.load %arg1[%c0_17, %c0_18] : memref<2x1024xf32, #tpu.memory_space<vmem>>, vector<2x1024xf32>
    %28 = arith.truncf %27 : vector<2x1024xf32> to vector<2x1024xbf16>
    %c49 = arith.constant 49 : index
    %c0_19 = arith.constant 0 : index
    %29 = vector.load %arg4[%c49, %c0_19] : memref<56x384xf32, #tpu.memory_space<vmem>>, vector<1x32xf32>
    %c0_20 = arith.constant 0 : index
    %c0_21 = arith.constant 0 : index
    %30 = vector.load %arg2[%c0_20, %c0_21] : memref<1024x32xbf16, #tpu.memory_space<vmem>>, vector<1024x32xbf16>
    %cst = arith.constant dense<0.000000e+00> : vector<2x32xf32>
    %31 = tpu.matmul %28, %30, %cst {dimension_numbers = #tpu.dot_dimension_numbers<[1], [0], [0], [1], [0, 0, 1, 1], [], []>} : vector<2x1024xbf16>, vector<1024x32xbf16>, vector<2x32xf32> -> vector<2x32xf32>
    %32 = vector.broadcast %29 : vector<1x32xf32> to vector<2x32xf32>
    %33 = arith.addf %31, %32 : vector<2x32xf32>
    %cst_22 = arith.constant 0.000000e+00 : f32
    %34 = vector.broadcast %cst_22 : f32 to vector<2x32xf32>
    %35 = arith.maximumf %33, %34 : vector<2x32xf32>
    %c144 = arith.constant 144 : index
    %c0_23 = arith.constant 0 : index
    %36 = vector.load %arg3[%c144, %c0_23] : memref<176x384xbf16, #tpu.memory_space<vmem>>, vector<32x16xbf16>
    %c50 = arith.constant 50 : index
    %c0_24 = arith.constant 0 : index
    %37 = vector.load %arg4[%c50, %c0_24] : memref<56x384xf32, #tpu.memory_space<vmem>>, vector<1x16xf32>
    %38 = arith.truncf %35 : vector<2x32xf32> to vector<2x32xbf16>
    %cst_25 = arith.constant dense<0.000000e+00> : vector<2x16xf32>
    %39 = tpu.matmul %38, %36, %cst_25 {dimension_numbers = #tpu.dot_dimension_numbers<[1], [0], [0], [1], [0, 0, 1, 1], [], []>} : vector<2x32xbf16>, vector<32x16xbf16>, vector<2x16xf32> -> vector<2x16xf32>
    %40 = vector.broadcast %37 : vector<1x16xf32> to vector<2x16xf32>
    %41 = arith.addf %39, %40 : vector<2x16xf32>
    %42 = arith.truncf %41 : vector<2x16xf32> to vector<2x16xbf16>
    %c0_26 = arith.constant 0 : index
    %c0_27 = arith.constant 0 : index
    %43 = vector.load %arg3[%c0_26, %c0_27] : memref<176x384xbf16, #tpu.memory_space<vmem>>, vector<16x384xbf16>
    %cst_28 = arith.constant dense<0.000000e+00> : vector<2x384xf32>
    %44 = tpu.matmul %42, %43, %cst_28 {dimension_numbers = #tpu.dot_dimension_numbers<[1], [0], [0], [1], [0, 0, 1, 1], [], []>} : vector<2x16xbf16>, vector<16x384xbf16>, vector<2x384xf32> -> vector<2x384xf32>
    %45 = arith.addf %44, %26 : vector<2x384xf32>
    %cst_29 = arith.constant 0.000000e+00 : f32
    %46 = vector.broadcast %cst_29 : f32 to vector<2x384xf32>
    %47 = arith.maximumf %45, %46 : vector<2x384xf32>
    %48 = vector.extract_strided_slice %47 {offsets = [0, 0], sizes = [2, 128], strides = [1, 1]} : vector<2x384xf32> to vector<2x128xf32>
    %49 = vector.extract_strided_slice %47 {offsets = [0, 128], sizes = [2, 256], strides = [1, 1]} : vector<2x384xf32> to vector<2x256xf32>
    %c16 = arith.constant 16 : index
    %c0_30 = arith.constant 0 : index
    %50 = vector.load %arg3[%c16, %c0_30] : memref<176x384xbf16, #tpu.memory_space<vmem>>, vector<128x32xbf16>
    %c51 = arith.constant 51 : index
    %c0_31 = arith.constant 0 : index
    %51 = vector.load %arg4[%c51, %c0_31] : memref<56x384xf32, #tpu.memory_space<vmem>>, vector<1x32xf32>
    %52 = arith.truncf %48 : vector<2x128xf32> to vector<2x128xbf16>
    %cst_32 = arith.constant dense<0.000000e+00> : vector<2x32xf32>
    %53 = tpu.matmul %52, %50, %cst_32 {dimension_numbers = #tpu.dot_dimension_numbers<[1], [0], [0], [1], [0, 0, 1, 1], [], []>} : vector<2x128xbf16>, vector<128x32xbf16>, vector<2x32xf32> -> vector<2x32xf32>
    %54 = vector.broadcast %51 : vector<1x32xf32> to vector<2x32xf32>
    %55 = arith.addf %53, %54 : vector<2x32xf32>
    %c48 = arith.constant 48 : index
    %c0_33 = arith.constant 0 : index
    %56 = vector.load %arg4[%c48, %c0_33] : memref<56x384xf32, #tpu.memory_space<vmem>>, vector<1x256xf32>
    %c52 = arith.constant 52 : index
    %c0_34 = arith.constant 0 : index
    %57 = vector.load %arg4[%c52, %c0_34] : memref<56x384xf32, #tpu.memory_space<vmem>>, vector<1x1xf32>
    %58 = vector.broadcast %56 : vector<1x256xf32> to vector<2x256xf32>
    %59 = arith.mulf %49, %58 : vector<2x256xf32>
    %cst_35 = arith.constant dense<0.000000e+00> : vector<2xf32>
    %60 = vector.multi_reduction <add>, %59, %cst_35 [1] : vector<2x256xf32> to vector<2xf32>
    %61 = vector.shape_cast %60 : vector<2xf32> to vector<2x1xf32>
    %62 = vector.broadcast %57 : vector<1x1xf32> to vector<2x1xf32>
    %63 = arith.addf %61, %62 : vector<2x1xf32>
    %cst_36 = arith.constant 0.000000e+00 : f32
    %64 = vector.broadcast %cst_36 : f32 to vector<2x96xf32>
    %65 = tpu.concatenate %55, %64 in 1 : vector<2x32xf32>, vector<2x96xf32> -> vector<2x128xf32>
    %66 = tpu.iota {dimensions = array<i32: 1>} : vector<2x128xi32>
    %c32_i32_37 = arith.constant 32 : i32
    %67 = vector.broadcast %c32_i32_37 : i32 to vector<2x128xi32>
    %68 = arith.cmpi eq, %66, %67 : vector<2x128xi32>
    %69 = vector.shape_cast %63 : vector<2x1xf32> to vector<2x1xf32>
    %70 = vector.broadcast %69 : vector<2x1xf32> to vector<2x128xf32>
    %71 = arith.select %68, %70, %65 : vector<2x128xi1>, vector<2x128xf32>
    %c0_38 = arith.constant 0 : index
    %c0_39 = arith.constant 0 : index
    %72 = vector.load %arg5[%c0_38, %c0_39] : memref<2x128xf32, #tpu.memory_space<vmem>>, vector<2x128xf32>
    tpu.vector_store %arg5[%c0_38, %c0_39], %71 {strides = array<i32>} : memref<2x128xf32, #tpu.memory_space<vmem>>, vector<2x128xf32>,
    return
  }
}

</mosaic_0001>

<bundles_post_ra>
// kernel: _policy_apply.1
= control target key start
LH: loop header
LB: loop body
LE: loop exit
PB: predicated region body
PF: predicated region fallthrough
CT: control target
= control target key end

     0   :  { %10 = vsyncpa [#allocation3], 0  ;;  %s1419_s21 = smov [#allocation2]   ;;  %s1782_s0 = inlined_call_operand.vmem [shape: s32[2,3], index: 0, kind: input, shape index: {}]   ;;  %s1783_s1 = inlined_call_operand.vmem [shape: f32[2,1024], index: 1, kind: input, shape index: {}]   ;;  %s1784_s2 = inlined_call_operand.vmem [shape: bf16[1024,32], index: 2, kind: input, shape index: {}]   ;;  %s1785_s3 = inlined_call_operand.vmem [shape: bf16[176,384], index: 3, kind: input, shape index: {}]   ;;  %s1786_s4 = inlined_call_operand.vmem [shape: f32[56,384], index: 4, kind: input, shape index: {}]   ;;  %s1787_s5 = inlined_call_operand.vmem [shape: f32[2,128], index: 5, kind: output, shape index: {}]  }
   0x1   :  { %s16_s20 = sshll.u32 %s1782_s0, 4  ;;  %s17_s20 = int_to_ptr.vmem [resolvable:$true] %s16_s20 }
   0x2   :  { %19 = dma.vmem_to_smem %s17_s20, 32, %s1419_s21, [#allocation3]  }
   0x3   :  { %1417 = dma.done.wait [#allocation3], 32  }
   0x4   :  { %1418 = vsyncadd [#allocation3], 4294967264 }
   0x5   :  { %32 = sfence }
   0x6   :  { %v1332_v0 = vld [vmem:[%s1784_s2 + $0x38] sm:$0xff]  ;;  %v1331_v4 = vld [vmem:[%s1784_s2 + $0x30] sm:$0xff]  ;;  %v1330_v8 = vld [vmem:[%s1784_s2 + $0x28] sm:$0xff]  ;;  %vm787_vm0 = vcmask 261120   ;;  %vm825_vm1 = vcmask 130048   ;;  %s1725_s13 = sld [smem:[#allocation2]] }
   0x7   :  { %v1340_v1 = vld [vmem:[%s1784_s2 + $0x78] sm:$0xff]  ;;  %664 = vmatpush.bf16.msra.mxu0 %v1332_v0  ;;  %v1339_v5 = vld [vmem:[%s1784_s2 + $0x70] sm:$0xff]  ;;  %v1338_v9 = vld [vmem:[%s1784_s2 + $0x68] sm:$0xff]  ;;  %s1002_s14 = sld [smem:[#allocation2 + $0x1]]  ;;  %vm116_vm2 = vcmask 1040384   ;;  %vm960_vm3 = vcmask 1041408  }
   0x8   :  { %v1348_v2 = vld [vmem:[%s1784_s2 + $0xb8] sm:$0xff]  ;;  %677 = vmatpush.bf16.msra.mxu1 %v1340_v1  ;;  %v1347_v6 = vld [vmem:[%s1784_s2 + $0xb0] sm:$0xff]  ;;  %v1346_v10 = vld [vmem:[%s1784_s2 + $0xa8] sm:$0xff]  ;;  %s1008_s15 = sld [smem:[#allocation2 + $0x81]] }
   0x9   :  { %v1356_v3 = vld [vmem:[%s1784_s2 + $0xf8] sm:$0xff]  ;;  %690 = vmatpush.bf16.msra.mxu2 %v1348_v2  ;;  %v1355_v7 = vld [vmem:[%s1784_s2 + $0xf0] sm:$0xff]  ;;  %v1354_v11 = vld [vmem:[%s1784_s2 + $0xe8] sm:$0xff]  ;;  %s1727_s16 = sld [smem:[#allocation2 + $0x2]] }
   0xa   :  { %703 = vmatpush.bf16.msra.mxu3 %v1356_v3  ;;  %v1329_v12 = vld [vmem:[%s1784_s2 + $0x20] sm:$0xff]  ;;  %v1328_v17 = vld [vmem:[%s1784_s2 + $0x18] sm:$0xff]  ;;  %v1327_v21 = vld [vmem:[%s1784_s2 + $0x10] sm:$0xff]  ;;  %s1729_s17 = sld [smem:[#allocation2 + $0x80]] }
   0xb   :  { %665 = vmatpush.bf16.msra.mxu0 %v1331_v4  ;;  %v1337_v13 = vld [vmem:[%s1784_s2 + $0x60] sm:$0xff]  ;;  %v1336_v18 = vld [vmem:[%s1784_s2 + $0x58] sm:$0xff]  ;;  %v1335_v22 = vld [vmem:[%s1784_s2 + $0x50] sm:$0xff]  ;;  %s1731_s18 = sld [smem:[#allocation2 + $0x82]] }
   0xc   :  { %678 = vmatpush.bf16.msra.mxu1 %v1339_v5  ;;  %v1345_v14 = vld [vmem:[%s1784_s2 + $0xa0] sm:$0xff]  ;;  %v1344_v19 = vld [vmem:[%s1784_s2 + $0x98] sm:$0xff]  ;;  %v1343_v23 = vld [vmem:[%s1784_s2 + $0x90] sm:$0xff]  ;;  %s35_s19 = sshra.s32 %s1725_s13, 3  ;;  %s38_s24 = sand.u32 7, %s1725_s13 }
   0xd   :  { %691 = vmatpush.bf16.msra.mxu2 %v1347_v6  ;;  %v1353_v15 = vld [vmem:[%s1784_s2 + $0xe0] sm:$0xff]  ;;  %v1352_v20 = vld [vmem:[%s1784_s2 + $0xd8] sm:$0xff]  ;;  %v1351_v24 = vld [vmem:[%s1784_s2 + $0xd0] sm:$0xff]  ;;  %s45_s20 = sadd.s32 16, %s1002_s14  ;;  %s1001_s26 = smul.u32 24, %s35_s19 }
   0xe   :  { %704 = vmatpush.bf16.msra.mxu3 %v1355_v7  ;;  %v120_v16 = vld [vmem:[%s1783_s1] sm:$0xff]  ;;  %v1326_v25 = vld [vmem:[%s1784_s2 + $0x8] sm:$0xff]  ;;  %v1364_v34 = vld [vmem:[%s1784_s2 + $0x138] sm:$0xff]  ;;  %s79_s25 = sadd.s32 16, %s1008_s15  ;;  %s46_s27 = sshra.s32 %s45_s20, 3 }
   0xf   :  { %666 = vmatpush.bf16.msra.mxu0 %v1330_v8  ;;  %124 = vst [vmem:[#allocation1] ss:$4 sm:$0xff] %v120_v16  ;;  %v1334_v26 = vld [vmem:[%s1784_s2 + $0x48] sm:$0xff]  ;;  %v1325_v30 = vld [vmem:[%s1784_s2] sm:$0xff]  ;;  %v1372_v35 = vld [vmem:[%s1784_s2 + $0x178] sm:$0xff]  ;;  %s57_s28 = sadd.s32 32, %s1727_s16  ;;  %s41_s19 = sadd.s32 %s1001_s26, %s38_s24 }
  0x10   :  { %679 = vmatpush.bf16.msra.mxu1 %v1338_v9  ;;  %v1342_v27 = vld [vmem:[%s1784_s2 + $0x88] sm:$0xff]  ;;  %v1333_v31 = vld [vmem:[%s1784_s2 + $0x40] sm:$0xff]  ;;  %v1380_v40 = vld [vmem:[%s1784_s2 + $0x1b8] sm:$0xff]  ;;  %s69_s0 = sshra.s32 %s1729_s17, 3  ;;  %s49_s29 = sand.u32 7, %s45_s20 }
  0x11   :  { %692 = vmatpush.bf16.msra.mxu2 %v1346_v10  ;;  %v1350_v28 = vld [vmem:[%s1784_s2 + $0xc8] sm:$0xff]  ;;  %v1341_v32 = vld [vmem:[%s1784_s2 + $0x80] sm:$0xff]  ;;  %v1388_v41 = vld [vmem:[%s1784_s2 + $0x1f8] sm:$0xff]  ;;  %s80_s30 = sshra.s32 %s79_s25, 3  ;;  %s1003_s10 = smul.u32 24, %s46_s27 }
  0x12   :  { %705 = vmatpush.bf16.msra.mxu3 %v1354_v11  ;;  %v121_v29 = vld [vmem:[%s1783_s1 + $0x8] sm:$0xff]  ;;  %v1349_v33 = vld [vmem:[%s1784_s2 + $0xc0] sm:$0xff]  ;;  %v1363_v46 = vld [vmem:[%s1784_s2 + $0x130] sm:$0xff]  ;;  %s91_s11 = sadd.s32 32, %s1731_s18  ;;  %s58_s1 = sshra.s32 %s57_s28, 3 }
  0x13   :  { %667 = vmatpush.bf16.msra.mxu0 %v1329_v12  ;;  %126 = vst [vmem:[#allocation1 + $0x20] ss:$4 sm:$0xff] %v121_v29  ;;  %v1371_v47 = vld [vmem:[%s1784_s2 + $0x170] sm:$0xff]  ;;  %v1362_v50 = vld [vmem:[%s1784_s2 + $0x128] sm:$0xff]  ;;  %v1361_v54 = vld [vmem:[%s1784_s2 + $0x120] sm:$0xff]  ;;  %s1007_s12 = smul.u32 24, %s69_s0  ;;  %s52_s20 = sadd.s32 %s1003_s10, %s49_s29 }
  0x14   :  { %680 = vmatpush.bf16.msra.mxu1 %v1337_v13  ;;  %v1379_v48 = vld [vmem:[%s1784_s2 + $0x1b0] sm:$0xff]  ;;  %v1370_v51 = vld [vmem:[%s1784_s2 + $0x168] sm:$0xff]  ;;  %v1369_v55 = vld [vmem:[%s1784_s2 + $0x160] sm:$0xff]  ;;  %s72_s13 = sand.u32 7, %s1729_s17  ;;  %s1009_s14 = smul.u32 24, %s80_s30 }
  0x15   :  { %693 = vmatpush.bf16.msra.mxu2 %v1345_v14  ;;  %v1387_v49 = vld [vmem:[%s1784_s2 + $0x1f0] sm:$0xff]  ;;  %v1378_v52 = vld [vmem:[%s1784_s2 + $0x1a8] sm:$0xff]  ;;  %v1377_v56 = vld [vmem:[%s1784_s2 + $0x1a0] sm:$0xff]  ;;  %s83_s15 = sand.u32 7, %s79_s25  ;;  %s92_s16 = sshra.s32 %s91_s11, 3 }
  0x16   :  { %706 = vmatpush.bf16.msra.mxu3 %v1353_v15  ;;  %v129_v36 = vld.sshfl [vmem:[#allocation1 + $0x10] sm:$0xff pattern:$0x73625140]  ;;  %v127_v37 = vld.sshfl [vmem:[#allocation1] sm:$0xff pattern:$0x73625140]  ;;  %s75_s21 = sadd.s32 %s1007_s12, %s72_s13  ;;  %s86_s22 = sadd.s32 %s1009_s14, %s83_s15 }
  0x17   :  { %668 = vmatpush.bf16.msra.mxu0 %v1328_v17  ;;  %v130_v38 = vld.sshfl [vmem:[#allocation1 + $0x18] sm:$0xff pattern:$0x73625140]  ;;  %v128_v39 = vld.sshfl [vmem:[#allocation1 + $0x8] sm:$0xff pattern:$0x73625140]  ;;  %v145_v42 = vpack.c.bf16 %v129_v36, %v129_v36  ;;  %v143_v43 = vpack.c.bf16 %v127_v37, %v127_v37  ;;  %s42_s18 = scalar_lea.vmem %s1786_s4, %s41_s19  ;;  %s53_s17 = scalar_lea.vmem %s1786_s4, %s52_s20 }
  0x18   :  { %681 = vmatpush.bf16.msra.mxu1 %v1336_v18  ;;  %v146_v44 = vpack.c.bf16 %v130_v38, %v130_v38  ;;  %v144_v45 = vpack.c.bf16 %v128_v39, %v128_v39  ;;  %v1386_v53 = vld [vmem:[%s1784_s2 + $0x1e8] sm:$0xff]  ;;  %v1385_v57 = vld [vmem:[%s1784_s2 + $0x1e0] sm:$0xff]  ;;  %v1360_v58 = vld [vmem:[%s1784_s2 + $0x118] sm:$0xff]  ;;  %s1011_s23 = smul.u32 24, %s92_s16  ;;  %s61_s6 = sand.u32 7, %s57_s28 }
  0x19   :  { %694 = vmatpush.bf16.msra.mxu2 %v1344_v19  ;;  %v1368_v59 = vld [vmem:[%s1784_s2 + $0x158] sm:$0xff]  ;;  %v1359_v62 = vld [vmem:[%s1784_s2 + $0x110] sm:$0xff]  ;;  %v1358_v2 = vld [vmem:[%s1784_s2 + $0x108] sm:$0xff]  ;;  %s95_s7 = sand.u32 7, %s91_s11  ;;  %s76_s25 = scalar_lea.vmem %s1786_s4, %s75_s21 }
  0x1a   :  { %707 = vmatpush.bf16.msra.mxu3 %v1352_v20  ;;  %v1376_v60 = vld [vmem:[%s1784_s2 + $0x198] sm:$0xff]  ;;  %v1367_v63 = vld [vmem:[%s1784_s2 + $0x150] sm:$0xff]  ;;  %v1366_v3 = vld [vmem:[%s1784_s2 + $0x148] sm:$0xff]  ;;  %s87_s29 = scalar_lea.vmem %s1786_s4, %s86_s22 }
  0x1b   :  { %669 = vmatpush.bf16.msra.mxu0 %v1327_v21  ;;  %v1384_v61 = vld [vmem:[%s1784_s2 + $0x1d8] sm:$0xff]  ;;  %v1375_v0 = vld [vmem:[%s1784_s2 + $0x190] sm:$0xff]  ;;  %v1374_v4 = vld [vmem:[%s1784_s2 + $0x188] sm:$0xff] }
  0x1c   :  { %682 = vmatpush.bf16.msra.mxu1 %v1335_v22  ;;  %v1383_v1 = vld [vmem:[%s1784_s2 + $0x1d0] sm:$0xff]  ;;  %v1382_v5 = vld [vmem:[%s1784_s2 + $0x1c8] sm:$0xff]  ;;  %v1357_v6 = vld [vmem:[%s1784_s2 + $0x100] sm:$0xff] }
  0x1d   :  { %695 = vmatpush.bf16.msra.mxu2 %v1343_v23  ;;  %v1365_v7 = vld [vmem:[%s1784_s2 + $0x140] sm:$0xff]  ;;  %v132_v11 = vld.sshfl [vmem:[#allocation1 + $0x28] sm:$0xff pattern:$0x73625140]  ;;  %v1274_v18 = vld [vmem:[%s1785_s3 + $0xf0] sm:$0xf] }
  0x1e   :  { %708 = vmatpush.bf16.msra.mxu3 %v1351_v24  ;;  %v1373_v8 = vld [vmem:[%s1784_s2 + $0x180] sm:$0xff]  ;;  %v133_v12 = vld.sshfl [vmem:[#allocation1 + $0x30] sm:$0xff pattern:$0x73625140]  ;;  %v148_v15 = vpack.c.bf16 %v132_v11, %v132_v11  ;;  %v1390_v19 = vld [vmem:[%s1785_s3 + $0xf8] sm:$0xf0] }
  0x1f   :  { %670 = vmatpush.bf16.msra.mxu0 %v1326_v25  ;;  %v1381_v9 = vld [vmem:[%s1784_s2 + $0x1c0] sm:$0xff]  ;;  %v134_v13 = vld.sshfl [vmem:[#allocation1 + $0x38] sm:$0xff pattern:$0x73625140]  ;;  %v149_v16 = vpack.c.bf16 %v133_v12, %v133_v12  ;;  %v1275_v20 = vor.u32 %v1390_v19, %v1274_v18  ;;  %v1393_v36 = vld [vmem:[%s1785_s3 + $0x10] sm:$0xf0] }
  0x20   :  { %683 = vmatpush.bf16.msra.mxu1 %v1334_v26  ;;  %v131_v10 = vld.sshfl [vmem:[#allocation1 + $0x20] sm:$0xff pattern:$0x73625140]  ;;  %v150_v17 = vpack.c.bf16 %v134_v13, %v134_v13  ;;  %v1270_v25 = vld [vmem:[%s1785_s3 + $0xd8] sm:$0xf]  ;;  %s1005_s2 = smul.u32 24, %s58_s1  ;;  %s98_s1 = sadd.s32 %s1011_s23, %s95_s7 }
  0x21   :  { %696 = vmatpush.bf16.msra.mxu2 %v1342_v27  ;;  %v147_v14 = vpack.c.bf16 %v131_v10, %v131_v10  ;;  %v1389_v26 = vld [vmem:[%s1785_s3 + $0xe0] sm:$0xf0]  ;;  %v1302_v11 = vld [vmem:[%s1785_s3 + $0x48] sm:$0xf]  ;;  %v1396_v12 = vld [vmem:[%s1785_s3 + $0x50] sm:$0xf0]  ;;  %s99_s15 = scalar_lea.vmem %s1786_s4, %s98_s1 }
  0x22   :  { %709 = vmatpush.bf16.msra.mxu3 %v1350_v28  ;;  %v1271_v28 = vor.u32 %v1389_v26, %v1270_v25  ;;  %v1303_v13 = vor.u32 %v1396_v12, %v1302_v11  ;;  %v1298_v19 = vld [vmem:[%s1785_s3 + $0x30] sm:$0xf]  ;;  %s64_s10 = sadd.s32 %s1005_s2, %s61_s6 }
  0x23   :  { %671 = vmatpush.bf16.msra.mxu0 %v1325_v30  ;;  %v1391_v30 = vld [vmem:[%s1785_s3 + $0x4] sm:$0xf]  ;;  %v43_v25 = vld [vmem:[%s42_s18] ss:$8 sm:$0x7]  ;;  %s65_s12 = scalar_lea.vmem %s1786_s4, %s64_s10 }
  0x24   :  { %684 = vmatpush.bf16.msra.mxu1 %v1333_v31  ;;  %v1281_v31 = vld [vmem:[%s1785_s3 + $0xc] sm:$0xf0] }
  0x25   :  { %697 = vmatpush.bf16.msra.mxu2 %v1341_v32  ;;  %v1287_v32 = vld [vmem:[%s1785_s3 + $0x8] sm:$0xf] }
  0x26   :  { %710 = vmatpush.bf16.msra.mxu3 %v1349_v33  ;;  %672 = vmatmul.bf16.vlgmr.msra.gmra.mxu0 %v143_v43  ;;  %v151_v33 = vld [vmem:[%s1786_s4 + $0x91] ss:$0 sm:$0xff]  ;;  %v1288_v38 = vor.u32 %v1393_v36, %v1287_v32  ;;  %v54_v26 = vld [vmem:[%s53_s17] ss:$8 sm:$0x7] }
  0x27   :  { %716 = vmatpush.bf16.msrb.mxu0 %v1364_v34  ;;  %685 = vmatmul.bf16.vlgmr.msra.gmra.mxu1 %v144_v45  ;;  %v100_v32 = vld [vmem:[%s99_s15] ss:$8 sm:$0x7] }
  0x28   :  { %729 = vmatpush.bf16.msrb.mxu1 %v1372_v35  ;;  %698 = vmatmul.bf16.vlgmr.msra.gmra.mxu2 %v145_v42  ;;  %v1284_v35 = vor.u32 %v1391_v30, %v1281_v31  ;;  %v66_v31 = vld [vmem:[%s65_s12] ss:$8 sm:$0x7] }
  0x29   :  { %742 = vmatpush.bf16.msrb.mxu2 %v1380_v40  ;;  %711 = vmatmul.bf16.vlgmr.msra.gmra.mxu3 %v146_v44 }
  0x2a   :  { %755 = vmatpush.bf16.msrb.mxu3 %v1388_v41 }
  0x2b   :  { %717 = vmatpush.bf16.msrb.mxu0 %v1363_v46 }
  0x2c   :  { %730 = vmatpush.bf16.msrb.mxu1 %v1371_v47 }
  0x2d   :  { %743 = vmatpush.bf16.msrb.mxu2 %v1379_v48 }
  0x2e   :  { %756 = vmatpush.bf16.msrb.mxu3 %v1387_v49 }
  0x2f   :  { %718 = vmatpush.bf16.msrb.mxu0 %v1362_v50 }
  0x30   :  { %731 = vmatpush.bf16.msrb.mxu1 %v1370_v51 }
  0x31   :  { %744 = vmatpush.bf16.msrb.mxu2 %v1378_v52 }
  0x32   :  { %757 = vmatpush.bf16.msrb.mxu3 %v1386_v53 }
  0x33   :  { %719 = vmatpush.bf16.msrb.mxu0 %v1361_v54 }
  0x34   :  { %732 = vmatpush.bf16.msrb.mxu1 %v1369_v55 }
  0x35   :  { %745 = vmatpush.bf16.msrb.mxu2 %v1377_v56 }
  0x36   :  { %758 = vmatpush.bf16.msrb.mxu3 %v1385_v57  ;;  %v1279_v57 = vld [vmem:[%s1785_s3] sm:$0xf] }
  0x37   :  { %720 = vmatpush.bf16.msrb.mxu0 %v1360_v58  ;;  %v1392_v58 = vld [vmem:[%s1785_s3 + $0x8] sm:$0xf0] }
  0x38   :  { %733 = vmatpush.bf16.msrb.mxu1 %v1368_v59  ;;  %v1280_v59 = vor.u32 %v1392_v58, %v1279_v57 }
  0x39   :  { %746 = vmatpush.bf16.msrb.mxu2 %v1376_v60  ;;  %v1322_v60 = vld [vmem:[%s1785_s3 + $0xc0] sm:$0xf] }
  0x3a   :  { %759 = vmatpush.bf16.msrb.mxu3 %v1384_v61  ;;  %v1401_v61 = vld [vmem:[%s1785_s3 + $0xc8] sm:$0xf0] }
  0x3b   :  { %721 = vmatpush.bf16.msrb.mxu0 %v1359_v62  ;;  %v1318_v62 = vld [vmem:[%s1785_s3 + $0xa8] sm:$0xf] }
  0x3c   :  { %734 = vmatpush.bf16.msrb.mxu1 %v1367_v63  ;;  %v1323_v63 = vor.u32 %v1401_v61, %v1322_v60 }
  0x3d   :  { %747 = vmatpush.bf16.msrb.mxu2 %v1375_v0  ;;  %v1400_v0 = vld [vmem:[%s1785_s3 + $0xb0] sm:$0xf0] }
  0x3e   :  { %760 = vmatpush.bf16.msrb.mxu3 %v1383_v1  ;;  %v1319_v1 = vor.u32 %v1400_v0, %v1318_v62 }
  0x3f   :  { %722 = vmatpush.bf16.msrb.mxu0 %v1358_v2  ;;  %v1314_v2 = vld [vmem:[%s1785_s3 + $0x90] sm:$0xf] }
  0x40   :  { %735 = vmatpush.bf16.msrb.mxu1 %v1366_v3  ;;  %v1399_v3 = vld [vmem:[%s1785_s3 + $0x98] sm:$0xf0] }
  0x41   :  { %748 = vmatpush.bf16.msrb.mxu2 %v1374_v4  ;;  %v1315_v4 = vor.u32 %v1399_v3, %v1314_v2  ;;  %v952_v2 = vld [vmem:[%s1786_s4 + $0x94] ss:$0 sm:$0xff] }
  0x42   :  { %761 = vmatpush.bf16.msrb.mxu3 %v1382_v5  ;;  %v1310_v5 = vld [vmem:[%s1785_s3 + $0x78] sm:$0xf] }
  0x43   :  { %723 = vmatpush.bf16.msrb.mxu0 %v1357_v6  ;;  %v1398_v6 = vld [vmem:[%s1785_s3 + $0x80] sm:$0xf0] }
  0x44   :  { %736 = vmatpush.bf16.msrb.mxu1 %v1365_v7  ;;  %v1311_v7 = vor.u32 %v1398_v6, %v1310_v5 }
  0x45   :  { %749 = vmatpush.bf16.msrb.mxu2 %v1373_v8  ;;  %v1306_v8 = vld [vmem:[%s1785_s3 + $0x60] sm:$0xf] }
  0x46   :  { %762 = vmatpush.bf16.msrb.mxu3 %v1381_v9  ;;  %724 = vmatmul.bf16.vlgmr.msrb.gmra.mxu0 %v147_v14  ;;  %v1397_v9 = vld [vmem:[%s1785_s3 + $0x68] sm:$0xf0]  ;;  %v773_v14 = vld [vmem:[%s1786_s4 + $0x92] ss:$0 sm:$0xff] }
  0x47   :  { %737 = vmatmul.bf16.vlgmr.msrb.gmra.mxu1 %v148_v15  ;;  %937 = vmatpush.bf16.msra.mxu0 %v1323_v63  ;;  %v1307_v10 = vor.u32 %v1397_v9, %v1306_v8  ;;  %v887_v8 = vld [vmem:[%s1786_s4 + $0x93] ss:$0 sm:$0xff] }
  0x48   :  { %750 = vmatmul.bf16.vlgmr.msrb.gmra.mxu2 %v149_v16  ;;  %797 = vmatpush.bf16.msra.mxu1 %v1275_v20  ;;  %v1395_v20 = vld [vmem:[%s1785_s3 + $0x38] sm:$0xf0] }
  0x49   :  { %763 = vmatmul.bf16.vlgmr.msrb.gmra.mxu3 %v150_v17  ;;  %849 = vmatpush.bf16.msra.mxu2 %v1284_v35 }
  0x4a   :  { %862 = vmatpush.bf16.msra.mxu3 %v1288_v38 }
  0x4b   :  { %938 = vmatpush.bf16.msra.mxu0 %v1319_v1  ;;  %v1420_v1 = vmov 0  }
  0x4c   :  { %798 = vmatpush.bf16.msra.mxu1 %v1271_v28  ;;  %v88_v28 = vld [vmem:[%s87_s29] ss:$8 sm:$0x7]  ;;  %1404 = vset.pattern.permute.xlu0 %v1420_v1 }
  0x4f   :  { %939 = vmatpush.bf16.msra.mxu0 %v1315_v4 }
  0x50   :  { %836 = vmatpush.bf16.msrb.mxu1 %v1280_v59 }
  0x53   :  { %940 = vmatpush.bf16.msra.mxu0 %v1311_v7  ;;  %v968_v7 = vlaneseq }
  0x55   :  { %v969_v9 = vand.u32 127, %v968_v7 }
  0x57   :  { %941 = vmatpush.bf16.msra.mxu0 %v1307_v10  ;;  %vm970_vm4 = vcmp.eq.s32.totalorder %v969_v9, 32 }
  0x5b   :  { %942 = vmatpush.bf16.msra.mxu0 %v1303_v13 }
  0xa3   :  { %v673_v21 = vpop.f32.mrf.mxu0 }
  0xa4   :  { %v686_v22 = vpop.f32.mrf.mxu1  ;;  %v674_v39 = vadd.f32 %v673_v21, %v151_v33  ;;  %v1299_v21 = vor.u32 %v1395_v20, %v1298_v19 }
  0xa6   :  { %v687_v40 = vadd.f32 %v686_v22, %v674_v39  ;;  %943 = vmatpush.bf16.msra.mxu0 %v1299_v21  ;;  %v1294_v22 = vld [vmem:[%s1785_s3 + $0x18] sm:$0xf] }
  0xab   :  { %v699_v23 = vpop.f32.mrf.mxu2  ;;  %v675_v27 = vpop.f32.mrf.mxu0 }
  0xac   :  { %v712_v24 = vpop.f32.mrf.mxu3  ;;  %v688_v29 = vpop.f32.mrf.mxu1  ;;  %v700_v41 = vadd.f32 %v699_v23, %v687_v40  ;;  %v1394_v23 = vld [vmem:[%s1785_s3 + $0x20] sm:$0xf0]  ;;  %v77_v27 = vld [vmem:[%s76_s25] ss:$8 sm:$0x7] }
  0xad   :  { %v55_v29 = vadd.f32 %v54_v26, %v43_v25  ;;  %v89_v30 = vadd.f32 %v88_v28, %v77_v27 }
  0xae   :  { %v713_v42 = vadd.f32 %v712_v24, %v700_v41  ;;  %v1295_v24 = vor.u32 %v1394_v23, %v1294_v22 }
  0xaf   :  { %v67_v33 = vadd.f32 %v66_v31, %v55_v29 }
  0xb0   :  { %944 = vmatpush.bf16.msra.mxu0 %v1295_v24 }
  0xb1   :  { %v103_v35 = vperm.slane %v67_v33, 0  ;;  %v104_v39 = vperm.slane %v67_v33, 1 }
  0xb3   :  { %v701_v34 = vpop.f32.mrf.mxu2 }
  0xb4   :  { %v714_v37 = vpop.f32.mrf.mxu3  ;;  %v101_v34 = vadd.f32 %v100_v32, %v89_v30 }
  0xb6   :  { %v110_v36 = vperm.slane %v101_v34, 0  ;;  %v111_v40 = vperm.slane %v101_v34, 1 }
  0xb8   :  { %v117_v37 = vsel %vm116_vm2, %v103_v35, %v110_v36 }
  0xc3   :  { %v725_v43 = vpop.f32.mrf.mxu0 }
  0xc4   :  { %v738_v44 = vpop.f32.mrf.mxu1  ;;  %v726_v45 = vadd.f32 %v725_v43, %v713_v42  ;;  %v105_v42 = vperm.slane %v67_v33, 2  ;;  %v112_v43 = vperm.slane %v101_v34, 2 }
  0xc6   :  { %v739_v46 = vadd.f32 %v738_v44, %v726_v45  ;;  %v118_v45 = vsel %vm116_vm2, %v104_v39, %v111_v40 }
  0xcb   :  { %v751_v47 = vpop.f32.mrf.mxu2  ;;  %v727_v50 = vpop.f32.mrf.mxu0 }
  0xcc   :  { %v764_v48 = vpop.f32.mrf.mxu3  ;;  %v752_v49 = vadd.f32 %v751_v47, %v739_v46  ;;  %v740_v51 = vpop.f32.mrf.mxu1  ;;  %v1324_v46 = vld [vmem:[%s1786_s4 + $0x90] ss:$8 sm:$0x3] }
  0xce   :  { %v765_v52 = vadd.f32 %v764_v48, %v752_v49  ;;  %v119_v48 = vsel %vm116_vm2, %v105_v42, %v112_v43 }
  0xd0   :  { %v768_v53 = vmax.f32 %v765_v52, 0.0  ;;  %v954_v52 = vperm.slane %v1324_v46, 0 }
  0xd2   :  { %v774_v54 = vpack.c.bf16 %v768_v53, %v768_v53 }
  0xd3   :  { %v753_v55 = vpop.f32.mrf.mxu2 }
  0xd4   :  { %v766_v56 = vpop.f32.mrf.mxu3  ;;  %1276 = vmatmul.msk.bf16.vlgmr.msra.gmra.mxu1 %vm787_vm0, %v774_v54  ;;  %v955_v55 = vperm.slane %v1324_v46, 1 }
 0x151   :  { %v800_v15 = vpop.f32.mrf.mxu1 }
 0x152   :  { %v801_v16 = vadd.f32 %v800_v15, %v773_v14 }
 0x154   :  { %v804_v17 = vpack.c.bf16 %v801_v16, %v801_v16 }
 0x156   :  { %1289 = vmatmul.msk.bf16.vlgmr.msrb.gmra.mxu1 %vm825_vm1, %v804_v17  ;;  %1290 = vmatmul.msk.bf16.vlgmr.msra.gmra.mxu2 %vm825_vm1, %v804_v17 }
 0x157   :  { %1291 = vmatmul.msk.bf16.vlgmr.msra.gmra.mxu3 %vm825_vm1, %v804_v17 }
 0x159   :  { %v802_v18 = vpop.f32.mrf.mxu1 }
 0x1d3   :  { %v838_v38 = vpop.f32.mrf.mxu1 }
 0x1d4   :  { %v839_v41 = vadd.f32 %v838_v38, %v117_v37 }
 0x1d6   :  { %v868_v44 = vmax.f32 %v839_v41, 0.0 }
 0x1d8   :  { %v888_v47 = vpack.c.bf16 %v868_v44, %v868_v44 }
 0x1d9   :  { %v851_v49 = vpop.f32.mrf.mxu2 }
 0x1da   :  { %v852_v50 = vadd.f32 %v851_v49, %v118_v45  ;;  %v864_v51 = vpop.f32.mrf.mxu3  ;;  %945 = vmatmul.bf16.vlgmr.msra.gmra.mxu0 %v888_v47 }
 0x1db   :  { %v865_v53 = vadd.f32 %v864_v51, %v119_v48  ;;  %v840_v54 = vpop.f32.mrf.mxu1 }
 0x1dc   :  { %v869_v56 = vmax.f32 %v852_v50, 0.0 }
 0x1dd   :  { %v870_v57 = vmax.f32 %v865_v53, 0.0 }
 0x1de   :  { %v958_v58 = vmul.f32 %v954_v52, %v869_v56 }
 0x1df   :  { %v959_v59 = vmul.f32 %v955_v55, %v870_v57 }
 0x1e0   :  { %v961_v60 = vsel %vm960_vm3, %v958_v58, 0.0 }
 0x1e1   :  { %v853_v61 = vpop.f32.mrf.mxu2  ;;  %v962_v62 = vsel %vm960_vm3, %v959_v59, 0.0 }
 0x1e2   :  { %v866_v63 = vpop.f32.mrf.mxu3  ;;  %v963_v0 = vadd.f32 %v962_v62, %v961_v60 }
 0x1e4   :  { %964 = vadd.xlane.f32.xlu0 %v963_v0 }
 0x257   :  { %v965_v3 = vpop.xlane.xlu0 %964  ;;  %v946_v4 = vpop.f32.mrf.mxu0 }
 0x258   :  { %v966_v5 = vadd.f32 %v965_v3, %v952_v2  ;;  %v947_v10 = vadd.f32 %v946_v4, %v887_v8 }
 0x25a   :  { %973 = vperm.xlu0 %1404, %v966_v5   ;;  %v967_v11 = vsel %vm787_vm0, %v947_v10, 0.0 }
 0x25f   :  { %v948_v6 = vpop.f32.mrf.mxu0 }
 0x2cc   :  { %v974_v12 = vpop.permute.xlu0 %973 }
 0x2cd   :  { %v976_v13 = vsel %vm970_vm4, %v974_v12, %v967_v11 }
 0x2ce   :  { %977 = vst [vmem:[%s1787_s5] sm:$0x3] %v976_v13 }
 0x2cf   :  { %982 = vsyncpa [#allocation3], 1 }

</bundles_post_ra>
